<compile_context>
chip_gen: v7x
topology: tpu7x:2x2x1
jax: 0.10.0
libtpu: 0.0.40
codegen_flags: <defaults>
</compile_context>

<pallas_src>
import functools

import jax
import jax.numpy as jnp
from jax.experimental import pallas as pl
from jax.experimental.pallas import tpu as pltpu

NEGATIVE_SLOPE = 0.2

# ~2 MiB per VMEM buffer: 1 input + 2 outputs, double-buffered = 6 buffers
# -> ~12 MiB resident, safe under every generation's default scoped VMEM.
_TARGET_TILE_BYTES = 2 * 1024 * 1024


def _leaky_relu_kernel(x_ref, out_ref, deriv_ref, *, negative_slope):
    x = x_ref[...]
    one = jnp.ones((), dtype=x.dtype)
    slope = jnp.asarray(negative_slope, dtype=x.dtype)
    # Single select with scalar operands (no full_like materialization), then
    # out = x * deriv: x*1 == x exactly, x*slope matches leaky_relu's neg branch.
    deriv = jnp.where(x >= 0, one, slope)
    deriv_ref[...] = deriv
    out_ref[...] = x * deriv


def invertable_leaky_relu_forward(x, negative_slope=NEGATIVE_SLOPE):
    """x: any-shape array (e.g. NCHW). Returns (output, derivative), same shape/dtype."""
    orig_shape = x.shape
    n_elem = x.size
    itemsize = jnp.dtype(x.dtype).itemsize

    # Pick the widest lane-dense slab width that divides the element count so
    # the common case needs no pad and no post-kernel slice (no extra HBM copies).
    lanes = None
    for c in (8192, 4096, 2048, 1024, 512, 256, 128):
        if n_elem % c == 0:
            lanes = c
            break

    if lanes is None:
        # Uncommon ragged case: pad flat array up to a multiple of 128 lanes.
        lanes = 128
        rows = pl.cdiv(n_elem, lanes)
        x_flat = jnp.pad(x.reshape(-1), (0, rows * lanes - n_elem))
        needs_slice = True
    else:
        rows = n_elem // lanes
        x_flat = x.reshape(-1)
        needs_slice = False
    x2d = x_flat.reshape(rows, lanes)

    # Large row tiles (multiple of 8 sublanes). If rows don't divide evenly,
    # keep the big tile and let Pallas mask the ragged last block instead of
    # shrinking the tile.
    target_rows = max(8, (_TARGET_TILE_BYTES // (lanes * itemsize)) // 8 * 8)
    if rows <= target_rows:
        block_rows = rows  # single block covering the full row extent
    else:
        block_rows = target_rows
    grid = (pl.cdiv(rows, block_rows),)

    kernel = functools.partial(_leaky_relu_kernel, negative_slope=negative_slope)

    out2d, deriv2d = pl.pallas_call(
        kernel,
        out_shape=(
            jax.ShapeDtypeStruct((rows, lanes), x.dtype),
            jax.ShapeDtypeStruct((rows, lanes), x.dtype),
        ),
        grid_spec=pltpu.PrefetchScalarGridSpec(
            num_scalar_prefetch=0,
            grid=grid,
            in_specs=[pl.BlockSpec((block_rows, lanes), lambda i: (i, 0))],
            out_specs=[
                pl.BlockSpec((block_rows, lanes), lambda i: (i, 0)),
                pl.BlockSpec((block_rows, lanes), lambda i: (i, 0)),
            ],
        ),
        compiler_params=pltpu.CompilerParams(
            dimension_semantics=("parallel",)),
    )(x2d)

    if needs_slice:
        out = out2d.reshape(-1)[:n_elem].reshape(orig_shape)
        deriv = deriv2d.reshape(-1)[:n_elem].reshape(orig_shape)
    else:
        out = out2d.reshape(orig_shape)
        deriv = deriv2d.reshape(orig_shape)
    return out, deriv


if __name__ == "__main__":
    key = jax.random.PRNGKey(0)
    # NCHW input, small shapes (batch=2, channels=4, spatial=16x16)
    x = jax.random.normal(key, (2, 4, 16, 16), dtype=jnp.float32)

    out, deriv = invertable_leaky_relu_forward(x, NEGATIVE_SLOPE)
    jax.block_until_ready((out, deriv))

    # Reference check (plain JAX)
    ref_out = jnp.where(x >= 0, x, NEGATIVE_SLOPE * x)
    ref_deriv = jnp.where(x >= 0, jnp.ones_like(x), jnp.full_like(x, NEGATIVE_SLOPE))
    assert out.shape == x.shape and out.dtype == x.dtype
    assert deriv.shape == x.shape and deriv.dtype == x.dtype
    assert jnp.allclose(out, ref_out)
    assert jnp.allclose(deriv, ref_deriv)

    print("KERNEL_OK")
</pallas_src>

<mosaic_0001>
module attributes {stable_mosaic.version = 11 : i64} {
  func.func @_leaky_relu_kernel(%arg0: i32, %arg1: memref<1x2048xf32, #tpu.memory_space<vmem>>, %arg2: memref<1x2048xf32, #tpu.memory_space<vmem>>, %arg3: memref<1x2048xf32, #tpu.memory_space<vmem>>) attributes {dimension_semantics = [#tpu.dimension_semantics<parallel>], iteration_bounds = array<i64: 1>, scalar_prefetch = 0 : i64, scratch_operands = 0 : i64, tpu.core_type = #tpu.core_type<tc>, window_params = [{transform_indices = @transform_0, window_bounds = array<i64: 1, 2048>}, {transform_indices = @transform_1, window_bounds = array<i64: 1, 2048>}, {transform_indices = @transform_2, window_bounds = array<i64: 1, 2048>}]} {
    %c0 = arith.constant 0 : index
    %c0_0 = arith.constant 0 : index
    %0 = vector.load %arg1[%c0, %c0_0] : memref<1x2048xf32, #tpu.memory_space<vmem>>, vector<1x2048xf32>
    %cst = arith.constant 0.000000e+00 : f32
    %1 = vector.broadcast %cst : f32 to vector<1x2048xf32>
    %2 = arith.cmpf oge, %0, %1 : vector<1x2048xf32>
    %cst_1 = arith.constant 1.000000e+00 : f32
    %cst_2 = arith.constant 2.000000e-01 : f32
    %3 = vector.broadcast %cst_1 : f32 to vector<1x2048xf32>
    %4 = vector.broadcast %cst_2 : f32 to vector<1x2048xf32>
    %5 = arith.select %2, %3, %4 : vector<1x2048xi1>, vector<1x2048xf32>
    %c0_3 = arith.constant 0 : index
    %c0_4 = arith.constant 0 : index
    %6 = vector.load %arg3[%c0_3, %c0_4] : memref<1x2048xf32, #tpu.memory_space<vmem>>, vector<1x2048xf32>
    tpu.vector_store %arg3[%c0_3, %c0_4], %5 {strides = array<i32>} : memref<1x2048xf32, #tpu.memory_space<vmem>>, vector<1x2048xf32>,
    %7 = arith.mulf %0, %5 : vector<1x2048xf32>
    %c0_5 = arith.constant 0 : index
    %c0_6 = arith.constant 0 : index
    %8 = vector.load %arg2[%c0_5, %c0_6] : memref<1x2048xf32, #tpu.memory_space<vmem>>, vector<1x2048xf32>
    tpu.vector_store %arg2[%c0_5, %c0_6], %7 {strides = array<i32>} : memref<1x2048xf32, #tpu.memory_space<vmem>>, vector<1x2048xf32>,
    return
  }
  func.func @transform_0(%arg0: i32) -> (i32, i32) {
    %c0_i32 = arith.constant 0 : i32
    %c0_i32_0 = arith.constant 0 : i32
    return %arg0, %c0_i32 : i32, i32
  }
  func.func @transform_1(%arg0: i32) -> (i32, i32) {
    %c0_i32 = arith.constant 0 : i32
    %c0_i32_0 = arith.constant 0 : i32
    return %arg0, %c0_i32 : i32, i32
  }
  func.func @transform_2(%arg0: i32) -> (i32, i32) {
    %c0_i32 = arith.constant 0 : i32
    %c0_i32_0 = arith.constant 0 : i32
    return %arg0, %c0_i32 : i32, i32
  }
}

</mosaic_0001>

<bundles_post_ra>
// kernel: tpu_custom_call.1
= control target key start
LH: loop header
LB: loop body
LE: loop exit
PB: predicated region body
PF: predicated region fallthrough
CT: control target
= control target key end

     0   :  { %8 = vsyncpa [#allocation3], 0  ;;  %s196_s0 = inlined_call_operand.hbm [shape: f32[1,2048], index: 0, kind: input, shape index: {}]   ;;  %s197_s1 = inlined_call_operand.hbm [shape: f32[1,2048], index: 1, kind: output, shape index: {0}]   ;;  %s198_s2 = inlined_call_operand.hbm [shape: f32[1,2048], index: 2, kind: output, shape index: {1}]  }
   0x1   :  { %9 = vsyncpa [#allocation4], 0 }
   0x2   :  { %10 = vsyncpa [#allocation7], 0  ;;  %s141_s9 = smov [#allocation2]   ;;  %s69_s13 = scalar_lea.hbm %s196_s0, 256 }
   0x3   :  { %s17_s10 = sshll.u32 %s141_s9, 4  ;;  %p70_p0 = scmp.ne.s32.totalorder %s196_s0, %s69_s13  ;;  %s18_s10 = int_to_ptr.vmem [resolvable:$true] %s17_s10 }
   0x4   :  { %p73_p1 = scmp.lt.u32.totalorder %s69_s13, %s196_s0 }
   0x6   :  { %p75_p2 = pnand %p73_p1, %p70_p0 }
   0x8   :  { %78 = shalt.err (!%p75_p2)
}
   0x9   :  { %s79_s18 = scalar_lea.vmem %s18_s10, 256  ;;  %p84_p4 = scmp.lt.s32.totalorder %s18_s10, %s18_s10 }
   0xa   :  { %p80_p3 = scmp.ne.s32.totalorder %s18_s10, %s79_s18  ;;  %p85_p5 = scmp.lt.s32.totalorder %s79_s18, %s79_s18 }
   0xc   :  { %p86_p6 = por %p85_p5, %p84_p4 }
   0xe   :  { %p87_p7 = pnand %p86_p6, %p80_p3 }
  0x10   :  { %90 = shalt.err (!%p87_p7)
}
  0x11   :  { %20 = dma.hbm_to_vmem [thread:$0]  %s196_s0, 256, %s18_s10, [#allocation3]  }
  0x12   :  { %135 = dma.done.wait [#allocation3], 256  }
  0x13   :  { %136 = vsyncadd [#allocation3], 4294967040  ;;  %s142_s21 = smov [#allocation6]   ;;  %v24_v0 = vld [vmem:[#allocation2] sm:$0xff]  ;;  %v25_v1 = vld [vmem:[#allocation2 + $0x8] sm:$0xff]  ;;  %s143_s23 = smov [#allocation5]  }
  0x14   :  { %s52_s22 = sshll.u32 %s142_s21, 4  ;;  %s42_s24 = sshll.u32 %s143_s23, 4  ;;  %vm26_vm0 = vcmp.ge.f32.partialorder %v24_v0, 0.0  ;;  %vm27_vm1 = vcmp.ge.f32.partialorder %v25_v1, 0.0  ;;  %v144_v2 = vmov 0.2   ;;  %s53_s22 = int_to_ptr.vmem [resolvable:$true] %s52_s22  ;;  %s43_s24 = int_to_ptr.vmem [resolvable:$true] %s42_s24 }
  0x15   :  { %v28_v3 = vsel %vm26_vm0, 1.0, %v144_v2  ;;  %v29_v4 = vsel %vm27_vm1, 1.0, %v144_v2  ;;  %s91_s0 = scalar_lea.vmem %s53_s22, 256  ;;  %p96_p9 = scmp.lt.s32.totalorder %s53_s22, %s53_s22 }
  0x16   :  { %30 = vst [vmem:[#allocation6] sm:$0xff] %v28_v3  ;;  %31 = vst [vmem:[#allocation6 + $0x8] sm:$0xff] %v29_v4  ;;  %v32_v5 = vmul.f32 %v28_v3, %v24_v0  ;;  %v33_v6 = vmul.f32 %v29_v4, %v25_v1  ;;  %p92_p8 = scmp.ne.s32.totalorder %s53_s22, %s91_s0  ;;  %p97_p10 = scmp.lt.s32.totalorder %s91_s0, %s91_s0 }
  0x18   :  { %p98_p11 = por %p97_p10, %p96_p9 }
  0x1a   :  { %p99_p12 = pnand %p98_p11, %p92_p8 }
  0x1c   :  { %102 = shalt.err (!%p99_p12)
}
  0x1d   :  { %s103_s27 = scalar_lea.hbm %s198_s2, 256 }
  0x1e   :  { %p104_p13 = scmp.ne.s32.totalorder %s198_s2, %s103_s27  ;;  %p107_p0 = scmp.lt.u32.totalorder %s103_s27, %s198_s2 }
  0x20   :  { %p109_p1 = pnand %p107_p0, %p104_p13 }
  0x22   :  { %112 = shalt.err (!%p109_p1)
}
  0x23   :  { %55 = dma.vmem_to_hbm [thread:$0]  %s53_s22, 256, %s198_s2, [#allocation7]   ;;  %34 = vst [vmem:[#allocation5] sm:$0xff] %v32_v5  ;;  %35 = vst [vmem:[#allocation5 + $0x8] sm:$0xff] %v33_v6 }
  0x24   :  { %s113_s6 = scalar_lea.vmem %s43_s24, 256  ;;  %p118_p3 = scmp.lt.s32.totalorder %s43_s24, %s43_s24 }
  0x25   :  { %p114_p2 = scmp.ne.s32.totalorder %s43_s24, %s113_s6  ;;  %p119_p4 = scmp.lt.s32.totalorder %s113_s6, %s113_s6 }
  0x27   :  { %p120_p5 = por %p119_p4, %p118_p3 }
  0x29   :  { %p121_p6 = pnand %p120_p5, %p114_p2 }
  0x2b   :  { %124 = shalt.err (!%p121_p6)
}
  0x2c   :  { %s125_s9 = scalar_lea.hbm %s197_s1, 256 }
  0x2d   :  { %p126_p7 = scmp.ne.s32.totalorder %s197_s1, %s125_s9  ;;  %p129_p8 = scmp.lt.u32.totalorder %s125_s9, %s197_s1 }
  0x2f   :  { %p131_p9 = pnand %p129_p8, %p126_p7 }
  0x31   :  { %134 = shalt.err (!%p131_p9)
}
  0x32   :  { %45 = dma.vmem_to_hbm [thread:$0]  %s43_s24, 256, %s197_s1, [#allocation4]  }
  0x33   :  { %137 = dma.done.wait [#allocation4], 256  }
  0x34   :  { %138 = vsyncadd [#allocation4], 4294967040 }
  0x35   :  { %139 = dma.done.wait [#allocation7], 256  }
  0x36   :  { %140 = vsyncadd [#allocation7], 4294967040 }
  0x37   :  { %62 = vsyncpa [#allocation3], 1 }
  0x38   :  { %63 = vsyncpa [#allocation4], 1 }
  0x39   :  { %64 = vsyncpa [#allocation7], 1 }

</bundles_post_ra>
